<compile_context>
chip_gen: v7x
topology: tpu7x:2x2x1
jax: 0.10.0
libtpu: 0.0.40
codegen_flags: <defaults>
</compile_context>

<pallas_src>
import numpy as np
import jax
import jax.numpy as jnp
from jax.experimental import pallas as pl
from jax.experimental.pallas import tpu as pltpu


def rbf_kernel(x_ref, c_ref, o_ref):
    # x_ref: (tn, 2)   point coordinates for this row tile
    # c_ref: (2, tc)   center coordinates (transposed) for this column tile
    # o_ref: (tn, tc)  output tile
    x = x_ref[...]
    c = c_ref[...]

    x0 = x[:, 0:1]                        # (tn, 1)
    x1 = x[:, 1:2]
    c0 = c[0:1, :]                        # (1, tc)
    c1 = c[1:2, :]
    xsq = x0 * x0 + x1 * x1               # (tn, 1)  -- negligible VALU work
    csq = c0 * c0 + c1 * c1               # (1, tc)  -- negligible VALU work

    # -2 * x . c on the MXU (K=2 is wasteful MXU use, but the MXU slot is idle
    # otherwise, so it is free filler).  HIGHEST precision keeps f32 accuracy.
    cross = jnp.dot(x * (-2.0), c,
                    preferred_element_type=jnp.float32,
                    precision=jax.lax.Precision.HIGHEST)   # (tn, tc)

    # Cancellation in ||x||^2 + ||c||^2 - 2 x.c can go slightly negative near
    # d ~= 0; clamp so sqrt never sees a negative.
    d2 = jnp.maximum(cross + xsq + csq, 0.0)
    d = jnp.sqrt(d2)                      # single EUP op; EUP has large slack

    one_minus_d = 1.0 - d
    # (1-d)^6 * (35 d^2 + 18 d + 3) / 3 == (1-d)^6 * ((35/3) d^2 + 6 d + 1)
    poly = (35.0 / 3.0) * d2 + 6.0 * d + 1.0
    # Integer power lowers to a 3-multiply VPU chain, not an EUP pow.
    o_ref[...] = ((one_minus_d ** 6) * poly).astype(o_ref.dtype)


def build_centers(n_centers):
    """Replicates RBF.__init__ center construction (assumes perfect squares)."""
    blocks = []
    for n in n_centers:
        k = int(np.sqrt(n))
        knots = jnp.linspace(0.0, 1.0, k)
        s1, s2 = jnp.meshgrid(knots, knots, indexing="ij")  # torch default 'ij'
        blocks.append(jnp.column_stack((s1.flatten(), s2.flatten())))
    return jnp.concatenate(blocks, axis=0).astype(jnp.float32)


def _round_up(a, m):
    return ((a + m - 1) // m) * m


def rbf_forward(x, centers, max_tn=1024, max_tc=2048, out_dtype=jnp.float32):
    """x: (N, 2), centers: (C, 2) -> (N, C)."""
    x = x.astype(jnp.float32)
    # Transpose once in the wrapper (C x 2 elements -> negligible) so centers
    # are lane-dense along C inside the kernel.
    centers_t = centers.astype(jnp.float32).T          # (2, C)
    N = x.shape[0]
    C = centers.shape[0]

    # Adaptive tile sizes: big enough to amortize the ~0.35 us/step pipeline
    # overhead, never bigger than the (8,128)-rounded problem.  1024 x 2048 f32
    # output tiles = 8 MiB (16 MiB double-buffered) -- fits the 32 MiB scoped
    # VMEM we request below on every generation (incl. v7x's 64 MiB physical).
    # TODO(synk): for v5e (HBM-write-bound) pass out_dtype=jnp.bfloat16 if the
    # consumer tolerates it -- halves write traffic, ~neutral on v6e/v7x.
    tn = min(max_tn, _round_up(N, 8))
    tc = min(max_tc, _round_up(C, 128))
    # v7x has 2 TensorCores: keep >= 2 steps on a parallel axis when possible
    # so a moderate problem doesn't collapse to a 1x1 grid and idle one core.
    if pl.cdiv(N, tn) == 1 and pl.cdiv(C, tc) == 1:
        if N > 8:
            tn = _round_up(pl.cdiv(N, 2), 8)
        elif C > 128:
            tc = _round_up(pl.cdiv(C, 2), 128)

    grid = (pl.cdiv(N, tn), pl.cdiv(C, tc))
    return pl.pallas_call(
        rbf_kernel,
        out_shape=jax.ShapeDtypeStruct((N, C), out_dtype),
        grid_spec=pltpu.PrefetchScalarGridSpec(
            num_scalar_prefetch=0,
            grid=grid,
            in_specs=[
                # Row tile of points: re-fetched only when i changes.
                pl.BlockSpec((tn, 2), lambda i, j: (i, 0)),
                # Column tile of (transposed) centers: small, fully pipelined.
                pl.BlockSpec((2, tc), lambda i, j: (0, j)),
            ],
            out_specs=pl.BlockSpec((tn, tc), lambda i, j: (i, j)),
        ),
        compiler_params=pltpu.CompilerParams(
            dimension_semantics=("parallel", "parallel"),
            vmem_limit_bytes=32 * 1024 * 1024,
        ),
    )(x, centers_t)


def rbf_reference(x, centers):
    # Pure-JAX reference of the torch forward.
    d = jnp.linalg.norm(x[:, None, :] - centers[None, :, :], axis=2)
    return (1.0 - d) ** 6 * (35.0 * d * d + 18.0 * d + 3.0) / 3.0


if __name__ == "__main__":
    # TODO(synk): the torch module omits the usual max(0, 1-d) compact-support
    # clamp; the kernel faithfully reproduces the unclamped formula.
    n_centers = [16, 64]                  # perfect squares, as the module assumes
    centers = build_centers(n_centers)    # (80, 2)

    key = jax.random.PRNGKey(0)
    N = 32
    x = jax.random.uniform(key, (N, 2), dtype=jnp.float32)  # points in [0,1]^2

    out = rbf_forward(x, centers)
    out = jax.block_until_ready(out)

    ref = rbf_reference(x, centers)
    assert out.shape == (N, int(np.sum(n_centers)))
    # atol 2e-5: the MXU form ||x||^2+||c||^2-2x.c rounds slightly differently
    # than the reference's direct (x-c)^2 near d ~= 0.
    np.testing.assert_allclose(np.asarray(out), np.asarray(ref),
                               rtol=1e-5, atol=2e-5)

    print("KERNEL_OK")
</pallas_src>

<mosaic_0001>
module attributes {stable_mosaic.version = 11 : i64} {
  func.func @rbf_kernel(%arg0: i32, %arg1: i32, %arg2: memref<16x2xf32, #tpu.memory_space<vmem>>, %arg3: memref<2x128xf32, #tpu.memory_space<vmem>>, %arg4: memref<16x128xf32, #tpu.memory_space<vmem>>) attributes {dimension_semantics = [#tpu.dimension_semantics<parallel>, #tpu.dimension_semantics<parallel>], iteration_bounds = array<i64: 2, 1>, scalar_prefetch = 0 : i64, scratch_operands = 0 : i64, tpu.core_type = #tpu.core_type<tc>, window_params = [{transform_indices = @transform_0, window_bounds = array<i64: 16, 2>}, {transform_indices = @transform_1, window_bounds = array<i64: 2, 128>}, {transform_indices = @transform_2, window_bounds = array<i64: 16, 128>}]} {
    %c0 = arith.constant 0 : index
    %c0_0 = arith.constant 0 : index
    %0 = vector.load %arg2[%c0, %c0_0] : memref<16x2xf32, #tpu.memory_space<vmem>>, vector<16x2xf32>
    %c0_1 = arith.constant 0 : index
    %c0_2 = arith.constant 0 : index
    %1 = vector.load %arg3[%c0_1, %c0_2] : memref<2x128xf32, #tpu.memory_space<vmem>>, vector<2x128xf32>
    %2 = vector.extract_strided_slice %0 {offsets = [0, 0], sizes = [16, 1], strides = [1, 1]} : vector<16x2xf32> to vector<16x1xf32>
    %3 = vector.extract_strided_slice %0 {offsets = [0, 1], sizes = [16, 1], strides = [1, 1]} : vector<16x2xf32> to vector<16x1xf32>
    %4 = vector.extract_strided_slice %1 {offsets = [0, 0], sizes = [1, 128], strides = [1, 1]} : vector<2x128xf32> to vector<1x128xf32>
    %5 = vector.extract_strided_slice %1 {offsets = [1, 0], sizes = [1, 128], strides = [1, 1]} : vector<2x128xf32> to vector<1x128xf32>
    %6 = arith.mulf %2, %2 : vector<16x1xf32>
    %7 = arith.mulf %3, %3 : vector<16x1xf32>
    %8 = arith.addf %6, %7 : vector<16x1xf32>
    %9 = arith.mulf %4, %4 : vector<1x128xf32>
    %10 = arith.mulf %5, %5 : vector<1x128xf32>
    %11 = arith.addf %9, %10 : vector<1x128xf32>
    %cst = arith.constant -2.000000e+00 : f32
    %12 = vector.broadcast %cst : f32 to vector<16x2xf32>
    %13 = arith.mulf %0, %12 : vector<16x2xf32>
    %cst_3 = arith.constant dense<0.000000e+00> : vector<16x128xf32>
    %14 = tpu.matmul %13, %1, %cst_3 {dimension_numbers = #tpu.dot_dimension_numbers<[1], [0], [0], [1], [0, 0, 1, 1], [], []>, precision = #tpu.contract_precision<fp32>} : vector<16x2xf32>, vector<2x128xf32>, vector<16x128xf32> -> vector<16x128xf32>
    %15 = vector.broadcast %8 : vector<16x1xf32> to vector<16x128xf32>
    %16 = arith.addf %14, %15 : vector<16x128xf32>
    %17 = vector.broadcast %11 : vector<1x128xf32> to vector<16x128xf32>
    %18 = arith.addf %16, %17 : vector<16x128xf32>
    %cst_4 = arith.constant 0.000000e+00 : f32
    %19 = vector.broadcast %cst_4 : f32 to vector<16x128xf32>
    %20 = arith.maximumf %18, %19 : vector<16x128xf32>
    %21 = math.sqrt %20 : vector<16x128xf32>
    %cst_5 = arith.constant 1.000000e+00 : f32
    %22 = vector.broadcast %cst_5 : f32 to vector<16x128xf32>
    %23 = arith.subf %22, %21 : vector<16x128xf32>
    %cst_6 = arith.constant 11.666667 : f32
    %24 = vector.broadcast %cst_6 : f32 to vector<16x128xf32>
    %25 = arith.mulf %24, %20 : vector<16x128xf32>
    %cst_7 = arith.constant 6.000000e+00 : f32
    %26 = vector.broadcast %cst_7 : f32 to vector<16x128xf32>
    %27 = arith.mulf %26, %21 : vector<16x128xf32>
    %28 = arith.addf %25, %27 : vector<16x128xf32>
    %cst_8 = arith.constant 1.000000e+00 : f32
    %29 = vector.broadcast %cst_8 : f32 to vector<16x128xf32>
    %30 = arith.addf %28, %29 : vector<16x128xf32>
    %31 = arith.mulf %23, %23 : vector<16x128xf32>
    %32 = arith.mulf %31, %31 : vector<16x128xf32>
    %33 = arith.mulf %31, %32 : vector<16x128xf32>
    %34 = arith.mulf %33, %30 : vector<16x128xf32>
    %c0_9 = arith.constant 0 : index
    %c0_10 = arith.constant 0 : index
    %35 = vector.load %arg4[%c0_9, %c0_10] : memref<16x128xf32, #tpu.memory_space<vmem>>, vector<16x128xf32>
    tpu.vector_store %arg4[%c0_9, %c0_10], %34 {strides = array<i32>} : memref<16x128xf32, #tpu.memory_space<vmem>>, vector<16x128xf32>,
    return
  }
  func.func @transform_0(%arg0: i32, %arg1: i32) -> (i32, i32) {
    %c0_i32 = arith.constant 0 : i32
    %c0_i32_0 = arith.constant 0 : i32
    return %arg0, %c0_i32 : i32, i32
  }
  func.func @transform_1(%arg0: i32, %arg1: i32) -> (i32, i32) {
    %c0_i32 = arith.constant 0 : i32
    %c0_i32_0 = arith.constant 0 : i32
    return %c0_i32, %arg1 : i32, i32
  }
  func.func @transform_2(%arg0: i32, %arg1: i32) -> (i32, i32) {
    %c0_i32 = arith.constant 0 : i32
    return %arg0, %arg1 : i32, i32
  }
}

</mosaic_0001>

<bundles_post_ra>
// kernel: tpu_custom_call.1
= control target key start
LH: loop header
LB: loop body
LE: loop exit
PB: predicated region body
PF: predicated region fallthrough
CT: control target
= control target key end

     0   :  { %7 = vsyncpa [#allocation3], 0  ;;  %s1214_s0 = inlined_call_operand.vmem [shape: f32[32,2], index: 0, kind: input, shape index: {}]   ;;  %s1215_s1 = inlined_call_operand.vmem [shape: f32[2,80], index: 1, kind: input, shape index: {}]   ;;  %s1216_s2 = inlined_call_operand.hbm [shape: f32[32,80], index: 2, kind: output, shape index: {}]  }
   0x1   :  { %9 = vsyncpa [#allocation3 + $0x1], 0  ;;  %s1092_s9 = smov 0   ;;  %s1094_s10 = smov 0  }
   0x2   :  { %s1096_s11 = smov 0   ;;  %s1098_s12 = smov 0  }
   0x3   :  { %s1100_s13 = smov 0   ;;  %s1102_s14 = smov 0  }
   0x4 LB: > { %s852_s15 = sadd.s32 4294967295, %s1070_s14   ;;  %s853_s16 = sadd.s32 4294967294, %s1070_s14   ;;  %s1070_s14 = sphi %s1102_s14, %s15_s14   ;;  %s1066_s13 = sphi %s1100_s13, %s1223_s13   ;;  %s1062_s12 = sphi %s1098_s12, %s1222_s12   ;;  %s1058_s11 = sphi %s1096_s11, %s1221_s11   ;;  %s1054_s10 = sphi %s1094_s10, %s1220_s10   ;;  %s1050_s9 = sphi %s1092_s9, %s1219_s9  }
   0x5   : > { %s27_s17 = sadd.s32 1, %s1066_s13  ;;  %s88_s18 = sadd.s32 1, %s1058_s11 }
   0x6   : > { %p29_p0 = scmp.ge.s32.totalorder %s27_s17, 2  ;;  %p98_p1 = scmp.ne.s32.totalorder %s1058_s11, %s1054_s10 }
   0x7   : > { %p99_p2 = scmp.eq.s32.totalorder %s852_s15, 1  ;;  %p104_p3 = scmp.ne.s32.totalorder %s1054_s10, %s1050_s9 }
   0x8   : > { %s1225_s17 = smov (%p29_p0, %s27_s17), 0  ;;  %p105_p5 = scmp.eq.s32.totalorder %s853_s16, 1 }
   0x9   : > { %p1132_p4 = por %p99_p2, %p98_p1  ;;  %s83_s20 = ssub.s32 %s1066_s13, %s1225_s17 }
   0xa   : > { %p857_p6 = scmp.ge.s32.totalorder %s1070_s14, 1  ;;  %p86_p7 = scmp.eq.s32.totalorder %s83_s20, 0 }
   0xb   : > { %p1139_p8 = por %p105_p5, %p104_p3  ;;  %p139_p9 = scmp.lt.s32.totalorder %s1070_s14, 3 }
   0xc   : > { %s1145_s22 = scalar_select %p86_p7, %s1058_s11, %s88_s18  }
   0xd   : > { %p140_p10 = pnand %p857_p6, %p139_p9 }
   0xe   : > { %s859_s23 = sshll.u32 (!%p140_p10), %s1062_s12, 1  ;;  %v1151_v0 = vld [vmem:[%s1215_s1] sm:$0x3] (!%p140_p10)  ;;  %vm215_vm0 = vcmask (!%p140_p10), 1041408   ;;  %v1072_v3 = vmov (!%p140_p10), 0   ;;  %vm208_vm1 = vcmask (!%p140_p10), 15360   ;;  %v708_v31 = vlaneseq (!%p140_p10) }
   0xf   : > { %143 = sbr.rel (%p140_p10) target bundleno = 325 (0x145), region = 28  ;;  %p166_p11 = scmp.lt.s32.totalorder (!%p140_p10), %s859_s23, 3  ;;  %v217_v1 = vsel (!%p140_p10), %vm215_vm0, %v1151_v0, 0  ;;  %986 = vset.pattern.permute.xlu1 (!%p140_p10), %v1072_v3  ;;  %987 = vset.pattern.permute.xlu0 (!%p140_p10), %v1072_v3  ;;  %v191_v30 = vmul.f32 (!%p140_p10), %v1151_v0, %v1151_v0 }
  0x10   : > { %v220_v2 = vand.u32 (!%p140_p10), 4294901760, %v217_v1  ;;  %s1073_s30 = smov (!%p140_p10), 127   ;;  %v709_v35 = vshrl.u32 (!%p140_p10), %v708_v31, 7  ;;  %s162_s3 = sand.u32 (!%p140_p10), 1, %s1054_s10  }
  0x11   : > { %v193_v34 = vrot.slane (!%p140_p10), %v191_v30, 1  ;;  %s858_s4 = sshll.u32 (!%p140_p10), %s162_s3, 4  ;;  %s866_s5 = sshll.u32 (!%p140_p10), %s1062_s12, 8 }
  0x12   : > { %900 = vmatprep.subr.mxu0 (!%p140_p10), %v220_v2  ;;  %885 = vmatprep.subr.mxu1 (!%p140_p10), %v220_v2  ;;  %v307_v4 = vsub.f32 (!%p140_p10), %v217_v1, %v220_v2  ;;  %v710_v39 = vsub.s32 (!%p140_p10), 0, %v709_v35  ;;  %s164_s6 = scalar_lea.vmem (!%p140_p10), [#allocation2], %s858_s4  ;;  %s1164_s16 = scalar_lea.hbm (!%p140_p10), %s1216_s2, %s866_s5 }
  0x13   : > { %901 = vmatpush3.msra.mxu0 (!%p140_p10), %v220_v2  ;;  %886 = vmatpush3.msra.mxu1 (!%p140_p10), %v220_v2  ;;  %v195_v38 = vadd.f32 (!%p140_p10), %v193_v34, %v191_v30  ;;  %s765_s7 = sshll.u32 (!%p140_p10), %s164_s6, 4  ;;  %s1168_s18 = scalar_lea.sflag (!%p140_p10), [#allocation3], %s162_s3  ;;  %s1166_s7 = int_to_ptr.vmem [resolvable:$true] %s765_s7 }
  0x14   : > { %v308_v5 = vand.u32 (!%p140_p10), 4294901760, %v307_v4  ;;  %s992_s12 = scalar_lea.vmem (!%p140_p10), %s1166_s7, 256  ;;  %s1074_s20 = smov (!%p140_p10), [#allocation2]  }
  0x15   : > { %v711_v41 = vrot.slane (!%p140_p10), %v195_v38, %v710_v39  ;;  %p993_p12 = scmp.ne.s32.totalorder (!%p140_p10), %s1166_s7, %s992_s12 }
  0x16   : > { %s1227_s23 = smov (!%p166_p11, %s859_s23), 3  ;;  %905 = vmatprep.subr.mxu0 %v308_v5  ;;  %v309_v11 = vsub.f32 %v307_v4, %v308_v5 }
  0x17   : > { %s860_s26 = sshll.u32 %s1227_s23, 3  ;;  %p994_p13 = pnand %p993_p12, %p1132_p4 }
  0x18   : > { %s169_s29 = scalar_lea.vmem %s1214_s0, %s860_s26  ;;  %v310_v17 = vand.u32 4294901760, %v309_v11  ;;  %s996_s23 = sshll.u32 %s1074_s20, 4  ;;  %s997_s23 = int_to_ptr.vmem [resolvable:$false] %s996_s23 }
  0x19   : > { %v176_v6 = vld [vmem:[%s169_s29] sm:$0xff]  ;;  %v177_v7 = vld [vmem:[%s169_s29 + $0x8] sm:$0xff]  ;;  %p995_p0 = pneg %p994_p13  ;;  %s998_s24 = scalar_lea.vmem %s997_s23, 512 }
  0x1a   : > { %v179_v8 = vmul.f32 %v176_v6, %v176_v6  ;;  %v196_v9 = vmul.f32 -2.0, %v176_v6  ;;  %v197_v10 = vmul.f32 -2.0, %v177_v7  ;;  %v180_v14 = vmul.f32 %v177_v7, %v177_v7  ;;  %890 = vmatprep.subr.mxu1 %v310_v17  ;;  %p999_p1 = scmp.lt.s32.totalorder %s1166_s7, %s997_s23  ;;  %p1000_p2 = scmp.lt.s32.totalorder %s998_s24, %s992_s12 }
  0x1c   : > { %v210_v12 = vsel %vm208_vm1, %v196_v9, 0  ;;  %v213_v13 = vsel %vm208_vm1, %v197_v10, 0  ;;  %183 = vrot.lane.b32.xlu0 %v179_v8, %s1073_s30  ;;  %p1001_p3 = por %p1000_p2, %p999_p1 }
  0x1d   : > { %v285_v15 = vand.u32 4294901760, %v210_v12  ;;  %v295_v16 = vand.u32 4294901760, %v213_v13 }
  0x1e   : > { %p1002_p5 = pnand %p1001_p3, %p995_p0 }
  0x1f   : > { %v286_v18 = vsub.f32 %v210_v12, %v285_v15  ;;  %v296_v19 = vsub.f32 %v213_v13, %v295_v16 }
  0x20   : > { %185 = vrot.lane.b32.xlu0 %v180_v14, %s1073_s30 }
  0x21   : > { %v287_v20 = vand.u32 4294901760, %v286_v18  ;;  %v297_v21 = vand.u32 4294901760, %v296_v19 }
  0x23   : > { %902 = vmatprep.mubr.f32.mxu0 %v287_v20  ;;  %v288_v22 = vsub.f32 %v286_v18, %v287_v20  ;;  %v298_v23 = vsub.f32 %v296_v19, %v297_v21 }
  0x24   : > { %903 = vmatmul.mubr.f32.vlgmr.msra.gmra.mrb[0].mxu0 %v297_v21 }
  0x25   : > { %v289_v24 = vand.u32 4294901760, %v288_v22  ;;  %v299_v25 = vand.u32 4294901760, %v298_v23  ;;  %906 = vmatpush3.msra.mxu0 %v308_v5  ;;  %907 = vmatprep.mubr.f32.mxu0 %v285_v15 }
  0x26   : > { %910 = vmatprep.subr.mxu0 %v220_v2 }
  0x27   : > { %887 = vmatprep.mubr.f32.mxu1 %v289_v24 }
  0x28   : > { %888 = vmatmul.mubr.f32.vlgmr.msra.gmra.mrb[0].mxu1 %v299_v25 }
  0x29   : > { %891 = vmatpush3.msra.mxu1 %v310_v17  ;;  %892 = vmatprep.mubr.f32.mxu1 %v285_v15 }
  0x2a   : > { %895 = vmatprep.subr.mxu1 %v307_v4 }
  0x2c   : > { %908 = vmatmul.mubr.f32.vlgmr.msra.gmra.mrb[0].mxu0 %v295_v16 }
  0x2d   : > { %911 = vmatpush3.msra.mxu0 %v220_v2  ;;  %912 = vmatprep.mubr.f32.mxu0 %v285_v15 }
  0x30   : > { %893 = vmatmul.mubr.f32.vlgmr.msra.gmra.mrb[0].mxu1 %v295_v16 }
  0x31   : > { %896 = vmatpush3.msra.mxu1 %v307_v4  ;;  %897 = vmatprep.mubr.f32.mxu1 %v286_v18 }
  0x34   : > { %913 = vmatmul.mubr.f32.vlgmr.msra.gmra.mrb[0].mxu0 %v295_v16 }
  0x38   : > { %898 = vmatmul.mubr.f32.vlgmr.msra.gmra.mrb[0].mxu1 %v296_v19 }
  0x8e   : > { %v184_v26 = vpop.permute.xlu0 %183 }
  0x8f   : > { %v189_v27 = vadd.f32 %v184_v26, %v179_v8 }
  0x91   : > { %200 = vperm.xlu1 %986, %v189_v27  }
  0x92   : > { %v186_v28 = vpop.permute.xlu0 %185 }
  0x93   : > { %v190_v29 = vadd.f32 %v186_v28, %v180_v14 }
  0x95   : > { %205 = vperm.xlu1 %986, %v190_v29  }
 0x107   : > { %v914_v32 = vpop.f32.mrb[0].mxu0 }
 0x108   : > { %v698_v33 = vpop.f32.mrb[1].mxu0 }
 0x10b   : > { %v899_v36 = vpop.f32.mrb[0].mxu1 }
 0x10c   : > { %v457_v37 = vpop.f32.mrb[1].mxu1 }
 0x110   : > { %v201_v40 = vpop.permute.xlu1 %200 }
 0x111   : > { %v917_v42 = vadd.f32 %v457_v37, %v201_v40 }
 0x113   : > { %v918_v43 = vadd.f32 %v917_v42, %v698_v33 }
 0x114   : > { %v206_v44 = vpop.permute.xlu1 %205 }
 0x115   : > { %v712_v45 = vadd.f32 %v918_v43, %v711_v41  ;;  %v915_v46 = vadd.f32 %v899_v36, %v206_v44 }
 0x117   : > { %v714_v47 = vmax.f32 %v712_v45, 0.0  ;;  %v916_v48 = vadd.f32 %v915_v46, %v914_v32 }
 0x119   : > { %988 = vrsqrt.f32 %v714_v47  ;;  %v713_v49 = vadd.f32 %v916_v48, %v711_v41  ;;  %vm718_vm2 = vcmp.eq.f32.partialorder %v714_v47, inf  ;;  %v721_v53 = vand.u32 2147483648, %v714_v47 }
 0x11a   : > { %vm720_vm3 = vcmp.eq.f32.partialorder %v714_v47, 0.0  ;;  %v732_v59 = vmul.f32 11.666667, %v714_v47 }
 0x11b   : > { %v715_v50 = vmax.f32 %v713_v49, 0.0 }
 0x11d   : > { %990 = vrsqrt.f32 %v715_v50  ;;  %vm725_vm4 = vcmp.eq.f32.partialorder %v715_v50, inf  ;;  %v728_v61 = vand.u32 2147483648, %v715_v50  ;;  %vm727_vm5 = vcmp.eq.f32.partialorder %v715_v50, 0.0 }
 0x11e   : > { %v733_v3 = vmul.f32 11.666667, %v715_v50 }
 0x123   : > { %v989_v51 = vpop.eup %988 }
 0x124   : > { %v717_v52 = vmul.f32 %v989_v51, %v714_v47 }
 0x126   : > { %v719_v54 = vsel %vm718_vm2, %v714_v47, %v717_v52 }
 0x127   : > { %v991_v55 = vpop.eup %990  ;;  %v722_v56 = vsel %vm720_vm3, %v721_v53, %v719_v54 }
 0x128   : > { %v724_v57 = vmul.f32 %v991_v55, %v715_v50  ;;  %v730_v58 = vsub.f32 1.0, %v722_v56  ;;  %v734_v60 = vmul.f32 6.0, %v722_v56 }
 0x12a   : > { %v726_v62 = vsel %vm725_vm4, %v715_v50, %v724_v57  ;;  %v736_v63 = vadd.f32 %v734_v60, %v732_v59  ;;  %v740_v0 = vmul.f32 %v730_v58, %v730_v58 }
 0x12b   : > { %v729_v1 = vsel %vm727_vm5, %v728_v61, %v726_v62 }
 0x12c   : > { %v731_v2 = vsub.f32 1.0, %v729_v1  ;;  %v735_v4 = vmul.f32 6.0, %v729_v1  ;;  %v742_v5 = vmul.f32 %v740_v0, %v740_v0  ;;  %v738_v7 = vadd.f32 1.0, %v736_v63 }
 0x12e   : > { %v737_v6 = vadd.f32 %v735_v4, %v733_v3  ;;  %v741_v8 = vmul.f32 %v731_v2, %v731_v2  ;;  %v744_v9 = vmul.f32 %v742_v5, %v740_v0 }
 0x130   : > { %v743_v10 = vmul.f32 %v741_v8, %v741_v8  ;;  %v746_v11 = vmul.f32 %v744_v9, %v738_v7  ;;  %v739_v12 = vadd.f32 1.0, %v737_v6 }
 0x132   : > { %v745_v13 = vmul.f32 %v743_v10, %v741_v8  ;;  %748 = vst [vmem:[%s164_s6] sm:$0xff] %v746_v11 }
 0x134   : > { %v747_v14 = vmul.f32 %v745_v13, %v739_v12 }
 0x136   : > { %749 = vst [vmem:[%s164_s6 + $0x8] sm:$0xff] %v747_v14 }
 0x137   : > { %1005 = shalt.err (!%p1002_p5)
}
 0x138   : > { %s1006_s25 = scalar_lea.hbm %s1164_s16, 256  ;;  %s1010_s28 = scalar_lea.hbm %s1216_s2, 512 }
 0x139   : > { %p1007_p6 = scmp.ne.s32.totalorder %s1164_s16, %s1006_s25  ;;  %p1011_p10 = scmp.lt.u32.totalorder %s1164_s16, %s1216_s2 }
 0x13a   : > { %p1012_p11 = scmp.lt.u32.totalorder %s1010_s28, %s1006_s25  ;;  %p1014_p13 = scmp.lt.u32.totalorder %s1006_s25, %s1164_s16 }
 0x13b   : > { %p1008_p7 = pnand %p1007_p6, %p1132_p4 }
 0x13c   : > { %p1013_p12 = por %p1012_p11, %p1011_p10 }
 0x13d   : > { %p1009_p9 = pneg %p1008_p7 }
 0x13e   : > { %p1015_p0 = por %p1014_p13, %p1013_p12 }
 0x140   : > { %p1016_p1 = pnand %p1015_p0, %p1009_p9 }
 0x142   : > { %1019 = shalt.err (!%p1016_p1)
}
 0x143   : > { %s1075_s3 = smov 128   ;;  %s1076_s4 = smov 8  }
 0x144   : > { %927 = dma.vmem_to_hbm [thread:$0]  (%p1132_p4), %s1166_s7, 256, %s1164_s16, %s1168_s18, %s1075_s3, %s1075_s3, %s1076_s4  }
 0x145 PF: > { %p933_p2 = scmp.ge.s32.totalorder %s1070_s14, 2  ;;  %s780_s5 = sand.u32 1, %s1050_s9  }
 0x146   : > { %s781_s6 = scalar_lea.sflag [#allocation3], %s780_s5 }
 0x147   : > { %p930_p3 = pnand %p933_p2, %p1139_p8 }
 0x149   : > { %1045 = dma.done.wait (!%p930_p3), %s781_s6, 256  }
 0x14a   : > { %1047 = vsyncadd (!%p930_p3), %s781_s6, 4294967040  ;;  %s15_s14 = sadd.s32 1, %s1070_s14   ;;  %s1219_s9 = smov %s1054_s10 }
 0x14b   : > { %p12_p5 = scmp.ge.s32.totalorder %s15_s14, 4   ;;  %s1220_s10 = smov %s1058_s11 }
 0x14c   : > { %s1221_s11 = smov %s1145_s22  ;;  %s1222_s12 = smov %s1066_s13 }
 0x14d   : > { %s1223_s13 = smov %s1225_s17  ;;  %14 = sbr.rel (!%p12_p5) target bundleno = 4 (0x4), region = 66 }
 0x154   :  { %786 = vsyncpa [#allocation3], 1 }
 0x155   :  { %788 = vsyncpa [#allocation3 + $0x1], 1 }

</bundles_post_ra>
